<compile_context>
chip_gen: v5e
topology: v5e:2x2
jax: 0.10.0
libtpu: 0.0.40
codegen_flags: <defaults>
</compile_context>

<pallas_src>
import functools

import jax
import jax.numpy as jnp
from jax.experimental import pallas as pl
from jax.experimental.pallas import tpu as pltpu


def _round_up(x, m):
    return ((x + m - 1) // m) * m


# ----------------------------------------------------------------------------
# Pallas kernels
# ----------------------------------------------------------------------------
def proj_kernel(x_ref, w_ref, apack_ref, wh_ref, fpair_ref):
    """Fused projection for one row tile.

    x_ref    : (TM, Fin)     w_ref     : (Fin, Fall)   (resident)
    apack_ref: (Fall, P)     (resident; block-diag packed a1/a2 vectors)
    wh_ref   : (TM, Fall)    fpair_ref : (TM, P)
    """
    wh = jnp.dot(x_ref[...], w_ref[...], preferred_element_type=jnp.float32)
    wh_ref[...] = wh
    fpair_ref[...] = jnp.dot(wh, apack_ref[...],
                             preferred_element_type=jnp.float32)


def _attend_rows(f1, f2row, mask, wadj, wh_h, alpha):
    """Attention for one row tile of one head; softmax normalization deferred."""
    e = f1 + f2row                                   # (TM, Np)
    e = jnp.where(e > 0, e, alpha * e)               # LeakyReLU(alpha)
    e = e * wadj                                     # WGAT edge weighting
    masked = jnp.where(mask, e, -9e15)               # scalar fill
    m = jnp.max(masked, axis=1, keepdims=True)
    p = jnp.exp(masked - m)
    s = jnp.sum(p, axis=1, keepdims=True)            # (TM, 1)
    h = jnp.dot(p, wh_h, preferred_element_type=jnp.float32)    # (TM, nhid)
    return h * pl.reciprocal(s, approx=True)         # deferred normalization


def hidden_kernel(f1_ref, f2t_ref, adj_ref, wadj_ref, wh_ref, o_ref,
                  *, nheads, nhid, alpha):
    """All hidden heads for one row tile; writes the concatenated output block.

    f1_ref : (TM, nheads)       f2t_ref : (nheads, Np)   (resident)
    adj_ref: (TM, Np)           wadj_ref: (TM, Np)
    wh_ref : (Np, nheads*nhid)  (resident)
    o_ref  : (TM, nheads*nhid)
    """
    mask = adj_ref[...] > 0                          # shared across heads
    wadj = wadj_ref[...]
    for h in range(nheads):                          # static unroll over heads
        f1 = f1_ref[:, h:h + 1]                      # (TM, 1)
        f2 = f2t_ref[h:h + 1, :]                     # (1, Np)
        wh_h = wh_ref[:, h * nhid:(h + 1) * nhid]    # (Np, nhid)
        hh = _attend_rows(f1, f2, mask, wadj, wh_h, alpha)
        hh = jnp.where(hh > 0, hh, jnp.exp(hh) - 1.0)    # ELU (concat=True)
        o_ref[:, h * nhid:(h + 1) * nhid] = hh


def final_kernel(f1_ref, f2t_ref, adj_ref, wadj_ref, wh_ref, o_ref, sm_ref,
                 *, alpha):
    """Output attention layer (concat=False) fused with ELU + row softmax."""
    mask = adj_ref[...] > 0
    h2 = _attend_rows(f1_ref[...], f2t_ref[...], mask, wadj_ref[...],
                      wh_ref[...], alpha)
    out = jnp.where(h2 > 0, h2, jnp.exp(h2) - 1.0)   # top-level elu
    o_ref[...] = out
    m = jnp.max(out, axis=1, keepdims=True)
    p = jnp.exp(out - m)
    sm_ref[...] = p * pl.reciprocal(jnp.sum(p, axis=1, keepdims=True),
                                    approx=True)


# ----------------------------------------------------------------------------
# pallas_call wrappers
# ----------------------------------------------------------------------------
_PAR = pltpu.CompilerParams(dimension_semantics=("parallel",))


def _projection(x, w_all, a_pack, tm):
    Np, Fin = x.shape
    Fall = w_all.shape[1]
    P = a_pack.shape[1]
    return pl.pallas_call(
        proj_kernel,
        out_shape=(jax.ShapeDtypeStruct((Np, Fall), jnp.float32),
                   jax.ShapeDtypeStruct((Np, P), jnp.float32)),
        grid_spec=pltpu.PrefetchScalarGridSpec(
            num_scalar_prefetch=0, grid=(Np // tm,),
            in_specs=[pl.BlockSpec((tm, Fin), lambda i: (i, 0)),
                      pl.BlockSpec((Fin, Fall), lambda i: (0, 0)),
                      pl.BlockSpec((Fall, P), lambda i: (0, 0))],
            out_specs=(pl.BlockSpec((tm, Fall), lambda i: (i, 0)),
                       pl.BlockSpec((tm, P), lambda i: (i, 0)))),
        compiler_params=_PAR,
    )(x, w_all, a_pack)


def _hidden_attention(f1, f2t, adj, wadj, wh, *, nheads, nhid, alpha, tm):
    Np = adj.shape[0]
    Fall = wh.shape[1]
    kernel = functools.partial(hidden_kernel, nheads=nheads, nhid=nhid,
                               alpha=alpha)
    return pl.pallas_call(
        kernel,
        out_shape=jax.ShapeDtypeStruct((Np, Fall), jnp.float32),
        grid_spec=pltpu.PrefetchScalarGridSpec(
            num_scalar_prefetch=0, grid=(Np // tm,),
            in_specs=[pl.BlockSpec((tm, nheads), lambda i: (i, 0)),
                      pl.BlockSpec((nheads, Np), lambda i: (0, 0)),
                      pl.BlockSpec((tm, Np), lambda i: (i, 0)),
                      pl.BlockSpec((tm, Np), lambda i: (i, 0)),
                      pl.BlockSpec((Np, Fall), lambda i: (0, 0))],
            out_specs=pl.BlockSpec((tm, Fall), lambda i: (i, 0))),
        compiler_params=_PAR,
    )(f1, f2t, adj, wadj, wh)


def _final_attention(f1, f2t, adj, wadj, wh, *, alpha, tm):
    Np = adj.shape[0]
    C = wh.shape[1]
    kernel = functools.partial(final_kernel, alpha=alpha)
    return pl.pallas_call(
        kernel,
        out_shape=(jax.ShapeDtypeStruct((Np, C), jnp.float32),
                   jax.ShapeDtypeStruct((Np, C), jnp.float32)),
        grid_spec=pltpu.PrefetchScalarGridSpec(
            num_scalar_prefetch=0, grid=(Np // tm,),
            in_specs=[pl.BlockSpec((tm, 1), lambda i: (i, 0)),
                      pl.BlockSpec((1, Np), lambda i: (0, 0)),
                      pl.BlockSpec((tm, Np), lambda i: (i, 0)),
                      pl.BlockSpec((tm, Np), lambda i: (i, 0)),
                      pl.BlockSpec((Np, C), lambda i: (0, 0))],
            out_specs=(pl.BlockSpec((tm, C), lambda i: (i, 0)),
                       pl.BlockSpec((tm, C), lambda i: (i, 0)))),
        compiler_params=_PAR,
    )(f1, f2t, adj, wadj, wh)


# ----------------------------------------------------------------------------
# Forward pass
# ----------------------------------------------------------------------------
def gat_forward(packed, x, adj, wadj, *, alpha, nheads, nhid, tm=None):
    """packed = {"hidden": (W_all, A_pack), "out": (W_o, A_pack_o)}."""
    N = x.shape[0]
    if tm is None:
        # Row-tile size: multiple of 8, capped at 256 so (adj, wadj) row tiles
        # plus double buffering stay well inside the 32 MiB scoped-VMEM default
        # (and v7x's 64 MiB physical VMEM) even for N in the low thousands.
        tm = 256 if N >= 256 else _round_up(N, 8)
    Np = _round_up(N, tm)
    pad_r = Np - N
    # Padded rows/cols have adj == 0 -> masked to -9e15 -> exp ~ 0 -> they
    # contribute nothing to real rows; padded output rows are sliced off.
    xp = jnp.pad(x, ((0, pad_r), (0, 0)))
    adjp = jnp.pad(adj, ((0, pad_r), (0, pad_r)))
    wadjp = jnp.pad(wadj, ((0, pad_r), (0, pad_r)))

    # dropout(x) == identity (eval mode)

    # -- layer 1: all heads fused ------------------------------------------
    w_all, a_pack = packed["hidden"]
    wh, fpair = _projection(xp, w_all, a_pack, tm)        # (Np,Fall), (Np,2H)
    f1 = fpair[:, :nheads]                                # (Np, nheads)
    f2t = fpair[:, nheads:].T                             # (nheads, Np) tiny
    h = _hidden_attention(f1, f2t, adjp, wadjp, wh,
                          nheads=nheads, nhid=nhid, alpha=alpha, tm=tm)

    # dropout(h) == identity (eval mode)

    # -- output layer (concat=False) + fused ELU / softmax ------------------
    w_o, a_pack_o = packed["out"]
    wh_o, fpair_o = _projection(h, w_o, a_pack_o, tm)     # (Np,C), (Np,2)
    f1_o = fpair_o[:, :1]
    f2t_o = fpair_o[:, 1:].T                              # (1, Np)
    out, sm = _final_attention(f1_o, f2t_o, adjp, wadjp, wh_o,
                               alpha=alpha, tm=tm)
    return out[:N], sm[:N]


# ----------------------------------------------------------------------------
# Parameters (xavier uniform, gain=1.414 as in pyGAT) + packing
# ----------------------------------------------------------------------------
def xavier_uniform(key, shape, gain=1.414):
    fan_in, fan_out = shape[0], shape[1]
    bound = gain * jnp.sqrt(6.0 / (fan_in + fan_out))
    return jax.random.uniform(key, shape, jnp.float32, -bound, bound)


def init_params(key, nfeat, nhid, nclass, nheads):
    heads = []
    for _ in range(nheads):
        key, kw, ka = jax.random.split(key, 3)
        W = xavier_uniform(kw, (nfeat, nhid))
        a = xavier_uniform(ka, (2 * nhid, 1))
        heads.append((W, a[:nhid], a[nhid:]))            # (W, a1, a2)
    key, kw, ka = jax.random.split(key, 3)
    Wo = xavier_uniform(kw, (nhid * nheads, nclass))
    ao = xavier_uniform(ka, (2 * nclass, 1))
    return {"heads": heads, "out": (Wo, ao[:nclass], ao[nclass:])}


def pack_params(params, nheads, nhid):
    """Pack per-head weights into the fused layout used by the kernels."""
    Ws = [W for (W, _, _) in params["heads"]]
    w_all = jnp.concatenate(Ws, axis=1)                  # (Fin, nheads*nhid)
    Fall = nheads * nhid
    a_pack = jnp.zeros((Fall, 2 * nheads), jnp.float32)  # block-diagonal a1|a2
    for h, (_, a1, a2) in enumerate(params["heads"]):
        a_pack = a_pack.at[h * nhid:(h + 1) * nhid, h].set(a1[:, 0])
        a_pack = a_pack.at[h * nhid:(h + 1) * nhid, nheads + h].set(a2[:, 0])
    Wo, a1o, a2o = params["out"]
    a_pack_o = jnp.concatenate([a1o, a2o], axis=1)       # (nclass, 2)
    return {"hidden": (w_all, a_pack), "out": (Wo, a_pack_o)}


# ----------------------------------------------------------------------------
# Pure-JAX reference (same math) for a sanity check
# ----------------------------------------------------------------------------
def ref_layer(x, W, a1, a2, adj, wadj, *, alpha, concat):
    hi = jax.lax.Precision.HIGHEST
    wh = jnp.dot(x, W, precision=hi)
    e = jnp.dot(wh, a1, precision=hi) + jnp.dot(wh, a2, precision=hi).T
    e = jnp.where(e > 0, e, alpha * e) * wadj
    masked = jnp.where(adj > 0, e, -9e15)
    attn = jax.nn.softmax(masked, axis=1)
    h = jnp.dot(attn, wh, precision=hi)
    return jnp.where(h > 0, h, jnp.exp(h) - 1.0) if concat else h


def ref_forward(params, x, adj, wadj, *, alpha):
    heads = [ref_layer(x, W, a1, a2, adj, wadj, alpha=alpha, concat=True)
             for (W, a1, a2) in params["heads"]]
    h = jnp.concatenate(heads, axis=1)
    Wo, a1o, a2o = params["out"]
    h2 = ref_layer(h, Wo, a1o, a2o, adj, wadj, alpha=alpha, concat=False)
    out = jnp.where(h2 > 0, h2, jnp.exp(h2) - 1.0)
    return out, jax.nn.softmax(out, axis=1)


# ----------------------------------------------------------------------------
if __name__ == "__main__":
    N, nfeat, nhid, nclass, nheads = 16, 32, 16, 8, 2
    alpha = 0.2  # LeakyReLU slope
    # dropout = 0.6 in the torch module, but forward is evaluated in eval mode.

    key = jax.random.PRNGKey(0)
    key, kx, kadj, kwadj, kp = jax.random.split(key, 5)

    x = jax.random.normal(kx, (N, nfeat), jnp.float32)
    adj = (jax.random.uniform(kadj, (N, N)) < 0.3).astype(jnp.float32)
    adj = jnp.maximum(adj, jnp.eye(N, dtype=jnp.float32))           # self-loops
    wadj = jax.random.uniform(kwadj, (N, N), jnp.float32, 0.1, 1.0) * adj

    params = init_params(kp, nfeat, nhid, nclass, nheads)
    packed = pack_params(params, nheads, nhid)

    fwd = jax.jit(functools.partial(gat_forward, alpha=alpha,
                                    nheads=nheads, nhid=nhid))
    out, sm = fwd(packed, x, adj, wadj)
    jax.block_until_ready((out, sm))

    out_ref, sm_ref = ref_forward(params, x, adj, wadj, alpha=alpha)
    assert out.shape == (N, nclass) and sm.shape == (N, nclass)
    assert jnp.allclose(out, out_ref, rtol=2e-2, atol=1e-2)
    assert jnp.allclose(sm, sm_ref, rtol=2e-2, atol=1e-2)

    print("KERNEL_OK")
</pallas_src>

<mosaic_0001>
module attributes {stable_mosaic.version = 11 : i64} {
  func.func @proj_kernel(%arg0: i32, %arg1: memref<16x32xf32, #tpu.memory_space<vmem>>, %arg2: memref<32x32xf32, #tpu.memory_space<vmem>>, %arg3: memref<32x4xf32, #tpu.memory_space<vmem>>, %arg4: memref<16x32xf32, #tpu.memory_space<vmem>>, %arg5: memref<16x4xf32, #tpu.memory_space<vmem>>) attributes {dimension_semantics = [#tpu.dimension_semantics<parallel>], iteration_bounds = array<i64: 1>, scalar_prefetch = 0 : i64, scratch_operands = 0 : i64, tpu.core_type = #tpu.core_type<tc>, window_params = [{transform_indices = @transform_0, window_bounds = array<i64: 16, 32>}, {pipeline_mode = #tpu.pipeline_mode<synchronous>, transform_indices = @transform_1, window_bounds = array<i64: 32, 32>}, {pipeline_mode = #tpu.pipeline_mode<synchronous>, transform_indices = @transform_2, window_bounds = array<i64: 32, 4>}, {transform_indices = @transform_3, window_bounds = array<i64: 16, 32>}, {transform_indices = @transform_4, window_bounds = array<i64: 16, 4>}]} {
    %c0 = arith.constant 0 : index
    %c0_0 = arith.constant 0 : index
    %0 = vector.load %arg1[%c0, %c0_0] : memref<16x32xf32, #tpu.memory_space<vmem>>, vector<16x32xf32>
    %c0_1 = arith.constant 0 : index
    %c0_2 = arith.constant 0 : index
    %1 = vector.load %arg2[%c0_1, %c0_2] : memref<32x32xf32, #tpu.memory_space<vmem>>, vector<32x32xf32>
    %cst = arith.constant dense<0.000000e+00> : vector<16x32xf32>
    %2 = tpu.matmul %0, %1, %cst {dimension_numbers = #tpu.dot_dimension_numbers<[1], [0], [0], [1], [0, 0, 1, 1], [], []>} : vector<16x32xf32>, vector<32x32xf32>, vector<16x32xf32> -> vector<16x32xf32>
    %c0_3 = arith.constant 0 : index
    %c0_4 = arith.constant 0 : index
    %3 = vector.load %arg4[%c0_3, %c0_4] : memref<16x32xf32, #tpu.memory_space<vmem>>, vector<16x32xf32>
    tpu.vector_store %arg4[%c0_3, %c0_4], %2 {strides = array<i32>} : memref<16x32xf32, #tpu.memory_space<vmem>>, vector<16x32xf32>,
    %c0_5 = arith.constant 0 : index
    %c0_6 = arith.constant 0 : index
    %4 = vector.load %arg3[%c0_5, %c0_6] : memref<32x4xf32, #tpu.memory_space<vmem>>, vector<32x4xf32>
    %cst_7 = arith.constant dense<0.000000e+00> : vector<16x4xf32>
    %5 = tpu.matmul %2, %4, %cst_7 {dimension_numbers = #tpu.dot_dimension_numbers<[1], [0], [0], [1], [0, 0, 1, 1], [], []>} : vector<16x32xf32>, vector<32x4xf32>, vector<16x4xf32> -> vector<16x4xf32>
    %c0_8 = arith.constant 0 : index
    %c0_9 = arith.constant 0 : index
    %6 = vector.load %arg5[%c0_8, %c0_9] : memref<16x4xf32, #tpu.memory_space<vmem>>, vector<16x4xf32>
    tpu.vector_store %arg5[%c0_8, %c0_9], %5 {strides = array<i32>} : memref<16x4xf32, #tpu.memory_space<vmem>>, vector<16x4xf32>,
    return
  }
  func.func @transform_0(%arg0: i32) -> (i32, i32) {
    %c0_i32 = arith.constant 0 : i32
    %c0_i32_0 = arith.constant 0 : i32
    return %arg0, %c0_i32 : i32, i32
  }
  func.func @transform_1(%arg0: i32) -> (i32, i32) {
    %c0_i32 = arith.constant 0 : i32
    %c0_i32_0 = arith.constant 0 : i32
    %c0_i32_1 = arith.constant 0 : i32
    return %c0_i32, %c0_i32_0 : i32, i32
  }
  func.func @transform_2(%arg0: i32) -> (i32, i32) {
    %c0_i32 = arith.constant 0 : i32
    %c0_i32_0 = arith.constant 0 : i32
    %c0_i32_1 = arith.constant 0 : i32
    return %c0_i32, %c0_i32_0 : i32, i32
  }
  func.func @transform_3(%arg0: i32) -> (i32, i32) {
    %c0_i32 = arith.constant 0 : i32
    %c0_i32_0 = arith.constant 0 : i32
    return %arg0, %c0_i32 : i32, i32
  }
  func.func @transform_4(%arg0: i32) -> (i32, i32) {
    %c0_i32 = arith.constant 0 : i32
    %c0_i32_0 = arith.constant 0 : i32
    return %arg0, %c0_i32 : i32, i32
  }
}

module attributes {stable_mosaic.version = 11 : i64} {
  func.func @proj_kernel(%arg0: i32, %arg1: memref<16x32xf32, #tpu.memory_space<vmem>>, %arg2: memref<32x8xf32, #tpu.memory_space<vmem>>, %arg3: memref<8x2xf32, #tpu.memory_space<vmem>>, %arg4: memref<16x8xf32, #tpu.memory_space<vmem>>, %arg5: memref<16x2xf32, #tpu.memory_space<vmem>>) attributes {dimension_semantics = [#tpu.dimension_semantics<parallel>], iteration_bounds = array<i64: 1>, scalar_prefetch = 0 : i64, scratch_operands = 0 : i64, tpu.core_type = #tpu.core_type<tc>, window_params = [{transform_indices = @transform_0, window_bounds = array<i64: 16, 32>}, {pipeline_mode = #tpu.pipeline_mode<synchronous>, transform_indices = @transform_1, window_bounds = array<i64: 32, 8>}, {pipeline_mode = #tpu.pipeline_mode<synchronous>, transform_indices = @transform_2, window_bounds = array<i64: 8, 2>}, {transform_indices = @transform_3, window_bounds = array<i64: 16, 8>}, {transform_indices = @transform_4, window_bounds = array<i64: 16, 2>}]} {
    %c0 = arith.constant 0 : index
    %c0_0 = arith.constant 0 : index
    %0 = vector.load %arg1[%c0, %c0_0] : memref<16x32xf32, #tpu.memory_space<vmem>>, vector<16x32xf32>
    %c0_1 = arith.constant 0 : index
    %c0_2 = arith.constant 0 : index
    %1 = vector.load %arg2[%c0_1, %c0_2] : memref<32x8xf32, #tpu.memory_space<vmem>>, vector<32x8xf32>
    %cst = arith.constant dense<0.000000e+00> : vector<16x8xf32>
    %2 = tpu.matmul %0, %1, %cst {dimension_numbers = #tpu.dot_dimension_numbers<[1], [0], [0], [1], [0, 0, 1, 1], [], []>} : vector<16x32xf32>, vector<32x8xf32>, vector<16x8xf32> -> vector<16x8xf32>
    %c0_3 = arith.constant 0 : index
    %c0_4 = arith.constant 0 : index
    %3 = vector.load %arg4[%c0_3, %c0_4] : memref<16x8xf32, #tpu.memory_space<vmem>>, vector<16x8xf32>
    tpu.vector_store %arg4[%c0_3, %c0_4], %2 {strides = array<i32>} : memref<16x8xf32, #tpu.memory_space<vmem>>, vector<16x8xf32>,
    %c0_5 = arith.constant 0 : index
    %c0_6 = arith.constant 0 : index
    %4 = vector.load %arg3[%c0_5, %c0_6] : memref<8x2xf32, #tpu.memory_space<vmem>>, vector<8x2xf32>
    %cst_7 = arith.constant dense<0.000000e+00> : vector<16x2xf32>
    %5 = tpu.matmul %2, %4, %cst_7 {dimension_numbers = #tpu.dot_dimension_numbers<[1], [0], [0], [1], [0, 0, 1, 1], [], []>} : vector<16x8xf32>, vector<8x2xf32>, vector<16x2xf32> -> vector<16x2xf32>
    %c0_8 = arith.constant 0 : index
    %c0_9 = arith.constant 0 : index
    %6 = vector.load %arg5[%c0_8, %c0_9] : memref<16x2xf32, #tpu.memory_space<vmem>>, vector<16x2xf32>
    tpu.vector_store %arg5[%c0_8, %c0_9], %5 {strides = array<i32>} : memref<16x2xf32, #tpu.memory_space<vmem>>, vector<16x2xf32>,
    return
  }
  func.func @transform_0(%arg0: i32) -> (i32, i32) {
    %c0_i32 = arith.constant 0 : i32
    %c0_i32_0 = arith.constant 0 : i32
    return %arg0, %c0_i32 : i32, i32
  }
  func.func @transform_1(%arg0: i32) -> (i32, i32) {
    %c0_i32 = arith.constant 0 : i32
    %c0_i32_0 = arith.constant 0 : i32
    %c0_i32_1 = arith.constant 0 : i32
    return %c0_i32, %c0_i32_0 : i32, i32
  }
  func.func @transform_2(%arg0: i32) -> (i32, i32) {
    %c0_i32 = arith.constant 0 : i32
    %c0_i32_0 = arith.constant 0 : i32
    %c0_i32_1 = arith.constant 0 : i32
    return %c0_i32, %c0_i32_0 : i32, i32
  }
  func.func @transform_3(%arg0: i32) -> (i32, i32) {
    %c0_i32 = arith.constant 0 : i32
    %c0_i32_0 = arith.constant 0 : i32
    return %arg0, %c0_i32 : i32, i32
  }
  func.func @transform_4(%arg0: i32) -> (i32, i32) {
    %c0_i32 = arith.constant 0 : i32
    %c0_i32_0 = arith.constant 0 : i32
    return %arg0, %c0_i32 : i32, i32
  }
}

module attributes {stable_mosaic.version = 11 : i64} {
  func.func @hidden_kernel(%arg0: i32, %arg1: memref<16x2xf32, #tpu.memory_space<vmem>>, %arg2: memref<2x16xf32, #tpu.memory_space<vmem>>, %arg3: memref<16x16xf32, #tpu.memory_space<vmem>>, %arg4: memref<16x16xf32, #tpu.memory_space<vmem>>, %arg5: memref<16x32xf32, #tpu.memory_space<vmem>>, %arg6: memref<16x32xf32, #tpu.memory_space<vmem>>) attributes {dimension_semantics = [#tpu.dimension_semantics<parallel>], iteration_bounds = array<i64: 1>, scalar_prefetch = 0 : i64, scratch_operands = 0 : i64, tpu.core_type = #tpu.core_type<tc>, window_params = [{transform_indices = @transform_0, window_bounds = array<i64: 16, 2>}, {pipeline_mode = #tpu.pipeline_mode<synchronous>, transform_indices = @transform_1, window_bounds = array<i64: 2, 16>}, {transform_indices = @transform_2, window_bounds = array<i64: 16, 16>}, {transform_indices = @transform_3, window_bounds = array<i64: 16, 16>}, {pipeline_mode = #tpu.pipeline_mode<synchronous>, transform_indices = @transform_4, window_bounds = array<i64: 16, 32>}, {transform_indices = @transform_5, window_bounds = array<i64: 16, 32>}]} {
    %c0 = arith.constant 0 : index
    %c0_0 = arith.constant 0 : index
    %0 = vector.load %arg3[%c0, %c0_0] : memref<16x16xf32, #tpu.memory_space<vmem>>, vector<16x16xf32>
    %cst = arith.constant 0.000000e+00 : f32
    %1 = vector.broadcast %cst : f32 to vector<16x16xf32>
    %2 = arith.cmpf ogt, %0, %1 : vector<16x16xf32>
    %c0_1 = arith.constant 0 : index
    %c0_2 = arith.constant 0 : index
    %3 = vector.load %arg4[%c0_1, %c0_2] : memref<16x16xf32, #tpu.memory_space<vmem>>, vector<16x16xf32>
    %c0_3 = arith.constant 0 : index
    %c0_4 = arith.constant 0 : index
    %4 = vector.load %arg1[%c0_3, %c0_4] : memref<16x2xf32, #tpu.memory_space<vmem>>, vector<16x1xf32>
    %c0_5 = arith.constant 0 : index
    %c0_6 = arith.constant 0 : index
    %5 = vector.load %arg2[%c0_5, %c0_6] : memref<2x16xf32, #tpu.memory_space<vmem>>, vector<1x16xf32>
    %c0_7 = arith.constant 0 : index
    %c0_8 = arith.constant 0 : index
    %6 = vector.load %arg5[%c0_7, %c0_8] : memref<16x32xf32, #tpu.memory_space<vmem>>, vector<16x16xf32>
    %7 = vector.broadcast %4 : vector<16x1xf32> to vector<16x16xf32>
    %8 = vector.broadcast %5 : vector<1x16xf32> to vector<16x16xf32>
    %9 = arith.addf %7, %8 : vector<16x16xf32>
    %cst_9 = arith.constant 0.000000e+00 : f32
    %10 = vector.broadcast %cst_9 : f32 to vector<16x16xf32>
    %11 = arith.cmpf ogt, %9, %10 : vector<16x16xf32>
    %cst_10 = arith.constant 2.000000e-01 : f32
    %12 = vector.broadcast %cst_10 : f32 to vector<16x16xf32>
    %13 = arith.mulf %12, %9 : vector<16x16xf32>
    %14 = arith.select %11, %9, %13 : vector<16x16xi1>, vector<16x16xf32>
    %15 = arith.mulf %14, %3 : vector<16x16xf32>
    %cst_11 = arith.constant -9.000000e+15 : f32
    %16 = vector.broadcast %cst_11 : f32 to vector<16x16xf32>
    %17 = arith.select %2, %15, %16 : vector<16x16xi1>, vector<16x16xf32>
    %cst_12 = arith.constant dense<0xFF800000> : vector<16xf32>
    %18 = vector.multi_reduction <maximumf>, %17, %cst_12 [1] : vector<16x16xf32> to vector<16xf32>
    %19 = vector.shape_cast %18 : vector<16xf32> to vector<16x1xf32>
    %20 = vector.broadcast %19 : vector<16x1xf32> to vector<16x16xf32>
    %21 = arith.subf %17, %20 : vector<16x16xf32>
    %22 = math.exp %21 : vector<16x16xf32>
    %cst_13 = arith.constant dense<0.000000e+00> : vector<16xf32>
    %23 = vector.multi_reduction <add>, %22, %cst_13 [1] : vector<16x16xf32> to vector<16xf32>
    %24 = vector.shape_cast %23 : vector<16xf32> to vector<16x1xf32>
    %cst_14 = arith.constant dense<0.000000e+00> : vector<16x16xf32>
    %25 = tpu.matmul %22, %6, %cst_14 {dimension_numbers = #tpu.dot_dimension_numbers<[1], [0], [0], [1], [0, 0, 1, 1], [], []>} : vector<16x16xf32>, vector<16x16xf32>, vector<16x16xf32> -> vector<16x16xf32>
    %26 = tpu.reciprocal %24 {approx = true} : vector<16x1xf32> -> vector<16x1xf32>
    %27 = vector.broadcast %26 : vector<16x1xf32> to vector<16x16xf32>
    %28 = arith.mulf %25, %27 : vector<16x16xf32>
    %cst_15 = arith.constant 0.000000e+00 : f32
    %29 = vector.broadcast %cst_15 : f32 to vector<16x16xf32>
    %30 = arith.cmpf ogt, %28, %29 : vector<16x16xf32>
    %31 = math.exp %28 : vector<16x16xf32>
    %cst_16 = arith.constant 1.000000e+00 : f32
    %32 = vector.broadcast %cst_16 : f32 to vector<16x16xf32>
    %33 = arith.subf %31, %32 : vector<16x16xf32>
    %34 = arith.select %30, %28, %33 : vector<16x16xi1>, vector<16x16xf32>
    %c0_17 = arith.constant 0 : index
    %c0_18 = arith.constant 0 : index
    %35 = vector.load %arg6[%c0_17, %c0_18] : memref<16x32xf32, #tpu.memory_space<vmem>>, vector<16x16xf32>
    tpu.vector_store %arg6[%c0_17, %c0_18], %34 {strides = array<i32>} : memref<16x32xf32, #tpu.memory_space<vmem>>, vector<16x16xf32>,
    %c0_19 = arith.constant 0 : index
    %c1 = arith.constant 1 : index
    %36 = vector.load %arg1[%c0_19, %c1] : memref<16x2xf32, #tpu.memory_space<vmem>>, vector<16x1xf32>
    %c1_20 = arith.constant 1 : index
    %c0_21 = arith.constant 0 : index
    %37 = vector.load %arg2[%c1_20, %c0_21] : memref<2x16xf32, #tpu.memory_space<vmem>>, vector<1x16xf32>
    %c0_22 = arith.constant 0 : index
    %c16 = arith.constant 16 : index
    %38 = vector.load %arg5[%c0_22, %c16] : memref<16x32xf32, #tpu.memory_space<vmem>>, vector<16x16xf32>
    %39 = vector.broadcast %36 : vector<16x1xf32> to vector<16x16xf32>
    %40 = vector.broadcast %37 : vector<1x16xf32> to vector<16x16xf32>
    %41 = arith.addf %39, %40 : vector<16x16xf32>
    %cst_23 = arith.constant 0.000000e+00 : f32
    %42 = vector.broadcast %cst_23 : f32 to vector<16x16xf32>
    %43 = arith.cmpf ogt, %41, %42 : vector<16x16xf32>
    %cst_24 = arith.constant 2.000000e-01 : f32
    %44 = vector.broadcast %cst_24 : f32 to vector<16x16xf32>
    %45 = arith.mulf %44, %41 : vector<16x16xf32>
    %46 = arith.select %43, %41, %45 : vector<16x16xi1>, vector<16x16xf32>
    %47 = arith.mulf %46, %3 : vector<16x16xf32>
    %cst_25 = arith.constant -9.000000e+15 : f32
    %48 = vector.broadcast %cst_25 : f32 to vector<16x16xf32>
    %49 = arith.select %2, %47, %48 : vector<16x16xi1>, vector<16x16xf32>
    %cst_26 = arith.constant dense<0xFF800000> : vector<16xf32>
    %50 = vector.multi_reduction <maximumf>, %49, %cst_26 [1] : vector<16x16xf32> to vector<16xf32>
    %51 = vector.shape_cast %50 : vector<16xf32> to vector<16x1xf32>
    %52 = vector.broadcast %51 : vector<16x1xf32> to vector<16x16xf32>
    %53 = arith.subf %49, %52 : vector<16x16xf32>
    %54 = math.exp %53 : vector<16x16xf32>
    %cst_27 = arith.constant dense<0.000000e+00> : vector<16xf32>
    %55 = vector.multi_reduction <add>, %54, %cst_27 [1] : vector<16x16xf32> to vector<16xf32>
    %56 = vector.shape_cast %55 : vector<16xf32> to vector<16x1xf32>
    %cst_28 = arith.constant dense<0.000000e+00> : vector<16x16xf32>
    %57 = tpu.matmul %54, %38, %cst_28 {dimension_numbers = #tpu.dot_dimension_numbers<[1], [0], [0], [1], [0, 0, 1, 1], [], []>} : vector<16x16xf32>, vector<16x16xf32>, vector<16x16xf32> -> vector<16x16xf32>
    %58 = tpu.reciprocal %56 {approx = true} : vector<16x1xf32> -> vector<16x1xf32>
    %59 = vector.broadcast %58 : vector<16x1xf32> to vector<16x16xf32>
    %60 = arith.mulf %57, %59 : vector<16x16xf32>
    %cst_29 = arith.constant 0.000000e+00 : f32
    %61 = vector.broadcast %cst_29 : f32 to vector<16x16xf32>
    %62 = arith.cmpf ogt, %60, %61 : vector<16x16xf32>
    %63 = math.exp %60 : vector<16x16xf32>
    %cst_30 = arith.constant 1.000000e+00 : f32
    %64 = vector.broadcast %cst_30 : f32 to vector<16x16xf32>
    %65 = arith.subf %63, %64 : vector<16x16xf32>
    %66 = arith.select %62, %60, %65 : vector<16x16xi1>, vector<16x16xf32>
    %c0_31 = arith.constant 0 : index
    %c16_32 = arith.constant 16 : index
    %67 = vector.load %arg6[%c0_31, %c16_32] : memref<16x32xf32, #tpu.memory_space<vmem>>, vector<16x16xf32>
    tpu.vector_store %arg6[%c0_31, %c16_32], %66 {strides = array<i32>} : memref<16x32xf32, #tpu.memory_space<vmem>>, vector<16x16xf32>,
    return
  }
  func.func @transform_0(%arg0: i32) -> (i32, i32) {
    %c0_i32 = arith.constant 0 : i32
    %c0_i32_0 = arith.constant 0 : i32
    return %arg0, %c0_i32 : i32, i32
  }
  func.func @transform_1(%arg0: i32) -> (i32, i32) {
    %c0_i32 = arith.constant 0 : i32
    %c0_i32_0 = arith.constant 0 : i32
    %c0_i32_1 = arith.constant 0 : i32
    return %c0_i32, %c0_i32_0 : i32, i32
  }
  func.func @transform_2(%arg0: i32) -> (i32, i32) {
    %c0_i32 = arith.constant 0 : i32
    %c0_i32_0 = arith.constant 0 : i32
    return %arg0, %c0_i32 : i32, i32
  }
  func.func @transform_3(%arg0: i32) -> (i32, i32) {
    %c0_i32 = arith.constant 0 : i32
    %c0_i32_0 = arith.constant 0 : i32
    return %arg0, %c0_i32 : i32, i32
  }
  func.func @transform_4(%arg0: i32) -> (i32, i32) {
    %c0_i32 = arith.constant 0 : i32
    %c0_i32_0 = arith.constant 0 : i32
    %c0_i32_1 = arith.constant 0 : i32
    return %c0_i32, %c0_i32_0 : i32, i32
  }
  func.func @transform_5(%arg0: i32) -> (i32, i32) {
    %c0_i32 = arith.constant 0 : i32
    %c0_i32_0 = arith.constant 0 : i32
    return %arg0, %c0_i32 : i32, i32
  }
}

module attributes {stable_mosaic.version = 11 : i64} {
  func.func @final_kernel(%arg0: i32, %arg1: memref<16x1xf32, #tpu.memory_space<vmem>>, %arg2: memref<1x16xf32, #tpu.memory_space<vmem>>, %arg3: memref<16x16xf32, #tpu.memory_space<vmem>>, %arg4: memref<16x16xf32, #tpu.memory_space<vmem>>, %arg5: memref<16x8xf32, #tpu.memory_space<vmem>>, %arg6: memref<16x8xf32, #tpu.memory_space<vmem>>, %arg7: memref<16x8xf32, #tpu.memory_space<vmem>>) attributes {dimension_semantics = [#tpu.dimension_semantics<parallel>], iteration_bounds = array<i64: 1>, scalar_prefetch = 0 : i64, scratch_operands = 0 : i64, tpu.core_type = #tpu.core_type<tc>, window_params = [{transform_indices = @transform_0, window_bounds = array<i64: 16, 1>}, {pipeline_mode = #tpu.pipeline_mode<synchronous>, transform_indices = @transform_1, window_bounds = array<i64: 1, 16>}, {transform_indices = @transform_2, window_bounds = array<i64: 16, 16>}, {transform_indices = @transform_3, window_bounds = array<i64: 16, 16>}, {pipeline_mode = #tpu.pipeline_mode<synchronous>, transform_indices = @transform_4, window_bounds = array<i64: 16, 8>}, {transform_indices = @transform_5, window_bounds = array<i64: 16, 8>}, {transform_indices = @transform_6, window_bounds = array<i64: 16, 8>}]} {
    %c0 = arith.constant 0 : index
    %c0_0 = arith.constant 0 : index
    %0 = vector.load %arg3[%c0, %c0_0] : memref<16x16xf32, #tpu.memory_space<vmem>>, vector<16x16xf32>
    %cst = arith.constant 0.000000e+00 : f32
    %1 = vector.broadcast %cst : f32 to vector<16x16xf32>
    %2 = arith.cmpf ogt, %0, %1 : vector<16x16xf32>
    %c0_1 = arith.constant 0 : index
    %c0_2 = arith.constant 0 : index
    %3 = vector.load %arg1[%c0_1, %c0_2] : memref<16x1xf32, #tpu.memory_space<vmem>>, vector<16x1xf32>
    %c0_3 = arith.constant 0 : index
    %c0_4 = arith.constant 0 : index
    %4 = vector.load %arg2[%c0_3, %c0_4] : memref<1x16xf32, #tpu.memory_space<vmem>>, vector<1x16xf32>
    %c0_5 = arith.constant 0 : index
    %c0_6 = arith.constant 0 : index
    %5 = vector.load %arg4[%c0_5, %c0_6] : memref<16x16xf32, #tpu.memory_space<vmem>>, vector<16x16xf32>
    %c0_7 = arith.constant 0 : index
    %c0_8 = arith.constant 0 : index
    %6 = vector.load %arg5[%c0_7, %c0_8] : memref<16x8xf32, #tpu.memory_space<vmem>>, vector<16x8xf32>
    %7 = vector.broadcast %3 : vector<16x1xf32> to vector<16x16xf32>
    %8 = vector.broadcast %4 : vector<1x16xf32> to vector<16x16xf32>
    %9 = arith.addf %7, %8 : vector<16x16xf32>
    %cst_9 = arith.constant 0.000000e+00 : f32
    %10 = vector.broadcast %cst_9 : f32 to vector<16x16xf32>
    %11 = arith.cmpf ogt, %9, %10 : vector<16x16xf32>
    %cst_10 = arith.constant 2.000000e-01 : f32
    %12 = vector.broadcast %cst_10 : f32 to vector<16x16xf32>
    %13 = arith.mulf %12, %9 : vector<16x16xf32>
    %14 = arith.select %11, %9, %13 : vector<16x16xi1>, vector<16x16xf32>
    %15 = arith.mulf %14, %5 : vector<16x16xf32>
    %cst_11 = arith.constant -9.000000e+15 : f32
    %16 = vector.broadcast %cst_11 : f32 to vector<16x16xf32>
    %17 = arith.select %2, %15, %16 : vector<16x16xi1>, vector<16x16xf32>
    %cst_12 = arith.constant dense<0xFF800000> : vector<16xf32>
    %18 = vector.multi_reduction <maximumf>, %17, %cst_12 [1] : vector<16x16xf32> to vector<16xf32>
    %19 = vector.shape_cast %18 : vector<16xf32> to vector<16x1xf32>
    %20 = vector.broadcast %19 : vector<16x1xf32> to vector<16x16xf32>
    %21 = arith.subf %17, %20 : vector<16x16xf32>
    %22 = math.exp %21 : vector<16x16xf32>
    %cst_13 = arith.constant dense<0.000000e+00> : vector<16xf32>
    %23 = vector.multi_reduction <add>, %22, %cst_13 [1] : vector<16x16xf32> to vector<16xf32>
    %24 = vector.shape_cast %23 : vector<16xf32> to vector<16x1xf32>
    %cst_14 = arith.constant dense<0.000000e+00> : vector<16x8xf32>
    %25 = tpu.matmul %22, %6, %cst_14 {dimension_numbers = #tpu.dot_dimension_numbers<[1], [0], [0], [1], [0, 0, 1, 1], [], []>} : vector<16x16xf32>, vector<16x8xf32>, vector<16x8xf32> -> vector<16x8xf32>
    %26 = tpu.reciprocal %24 {approx = true} : vector<16x1xf32> -> vector<16x1xf32>
    %27 = vector.broadcast %26 : vector<16x1xf32> to vector<16x8xf32>
    %28 = arith.mulf %25, %27 : vector<16x8xf32>
    %cst_15 = arith.constant 0.000000e+00 : f32
    %29 = vector.broadcast %cst_15 : f32 to vector<16x8xf32>
    %30 = arith.cmpf ogt, %28, %29 : vector<16x8xf32>
    %31 = math.exp %28 : vector<16x8xf32>
    %cst_16 = arith.constant 1.000000e+00 : f32
    %32 = vector.broadcast %cst_16 : f32 to vector<16x8xf32>
    %33 = arith.subf %31, %32 : vector<16x8xf32>
    %34 = arith.select %30, %28, %33 : vector<16x8xi1>, vector<16x8xf32>
    %c0_17 = arith.constant 0 : index
    %c0_18 = arith.constant 0 : index
    %35 = vector.load %arg6[%c0_17, %c0_18] : memref<16x8xf32, #tpu.memory_space<vmem>>, vector<16x8xf32>
    tpu.vector_store %arg6[%c0_17, %c0_18], %34 {strides = array<i32>} : memref<16x8xf32, #tpu.memory_space<vmem>>, vector<16x8xf32>,
    %cst_19 = arith.constant dense<0xFF800000> : vector<16xf32>
    %36 = vector.multi_reduction <maximumf>, %34, %cst_19 [1] : vector<16x8xf32> to vector<16xf32>
    %37 = vector.shape_cast %36 : vector<16xf32> to vector<16x1xf32>
    %38 = vector.broadcast %37 : vector<16x1xf32> to vector<16x8xf32>
    %39 = arith.subf %34, %38 : vector<16x8xf32>
    %40 = math.exp %39 : vector<16x8xf32>
    %cst_20 = arith.constant dense<0.000000e+00> : vector<16xf32>
    %41 = vector.multi_reduction <add>, %40, %cst_20 [1] : vector<16x8xf32> to vector<16xf32>
    %42 = vector.shape_cast %41 : vector<16xf32> to vector<16x1xf32>
    %43 = tpu.reciprocal %42 {approx = true} : vector<16x1xf32> -> vector<16x1xf32>
    %44 = vector.broadcast %43 : vector<16x1xf32> to vector<16x8xf32>
    %45 = arith.mulf %40, %44 : vector<16x8xf32>
    %c0_21 = arith.constant 0 : index
    %c0_22 = arith.constant 0 : index
    %46 = vector.load %arg7[%c0_21, %c0_22] : memref<16x8xf32, #tpu.memory_space<vmem>>, vector<16x8xf32>
    tpu.vector_store %arg7[%c0_21, %c0_22], %45 {strides = array<i32>} : memref<16x8xf32, #tpu.memory_space<vmem>>, vector<16x8xf32>,
    return
  }
  func.func @transform_0(%arg0: i32) -> (i32, i32) {
    %c0_i32 = arith.constant 0 : i32
    %c0_i32_0 = arith.constant 0 : i32
    return %arg0, %c0_i32 : i32, i32
  }
  func.func @transform_1(%arg0: i32) -> (i32, i32) {
    %c0_i32 = arith.constant 0 : i32
    %c0_i32_0 = arith.constant 0 : i32
    %c0_i32_1 = arith.constant 0 : i32
    return %c0_i32, %c0_i32_0 : i32, i32
  }
  func.func @transform_2(%arg0: i32) -> (i32, i32) {
    %c0_i32 = arith.constant 0 : i32
    %c0_i32_0 = arith.constant 0 : i32
    return %arg0, %c0_i32 : i32, i32
  }
  func.func @transform_3(%arg0: i32) -> (i32, i32) {
    %c0_i32 = arith.constant 0 : i32
    %c0_i32_0 = arith.constant 0 : i32
    return %arg0, %c0_i32 : i32, i32
  }
  func.func @transform_4(%arg0: i32) -> (i32, i32) {
    %c0_i32 = arith.constant 0 : i32
    %c0_i32_0 = arith.constant 0 : i32
    %c0_i32_1 = arith.constant 0 : i32
    return %c0_i32, %c0_i32_0 : i32, i32
  }
  func.func @transform_5(%arg0: i32) -> (i32, i32) {
    %c0_i32 = arith.constant 0 : i32
    %c0_i32_0 = arith.constant 0 : i32
    return %arg0, %c0_i32 : i32, i32
  }
  func.func @transform_6(%arg0: i32) -> (i32, i32) {
    %c0_i32 = arith.constant 0 : i32
    %c0_i32_0 = arith.constant 0 : i32
    return %arg0, %c0_i32 : i32, i32
  }
}

</mosaic_0001>

<bundles_post_ra>
// kernel: gat_forward.6
= control target key start
LH: loop header
LB: loop body
LE: loop exit
PB: predicated region body
PF: predicated region fallthrough
CT: control target
= control target key end

     0   :  { %vm22_vm0 = vcmask 261120   ;;  %vm52_vm1 = vcmask 64512   ;;  %vm85_vm2 = vcmask 15360   ;;  %s163_s1 = inlined_call_operand.vmem [shape: f32[32,8], index: 1, kind: input, shape index: {}]   ;;  %s164_s0 = inlined_call_operand.vmem [shape: f32[16,32], index: 0, kind: input, shape index: {}]   ;;  %s165_s2 = inlined_call_operand.vmem [shape: f32[8,2], index: 2, kind: input, shape index: {}]   ;;  %s166_s3 = inlined_call_operand.vmem [shape: f32[16,8], index: 3, kind: output, shape index: {0}]   ;;  %s167_s4 = inlined_call_operand.vmem [shape: f32[16,2], index: 4, kind: output, shape index: {1}]  }
   0x1   :  { %v21_v0 = vld [vmem:[%s163_s1 + $0x18] sm:$0xff]  ;;  %v20_v1 = vld [vmem:[%s163_s1 + $0x10] sm:$0xff]  ;;  %v19_v2 = vld [vmem:[%s163_s1 + $0x8] sm:$0xff] }
   0x2   :  { %100 = vmatpush.msra.mxu2 %v21_v0  ;;  %41 = vmatpush.msra.mxu0 %v21_v0  ;;  %v18_v3 = vld [vmem:[%s163_s1] sm:$0xff]  ;;  %v17_v4 = vld [vmem:[%s164_s0 + $0x8] sm:$0xff] }
   0x3   :  { %v16_v5 = vld [vmem:[%s164_s0] sm:$0xff] }
   0x4   :  { %101 = vmatpush.msra.mxu2 %v20_v1  ;;  %42 = vmatpush.msra.mxu0 %v20_v1  ;;  %v55_v6 = vld [vmem:[%s165_s2] sm:$0xff] }
   0x5   :  { %104 = vmatpush.msra.mxu3 %v55_v6  ;;  %77 = vmatpush.msra.mxu1 %v55_v6 }
   0x6   :  { %102 = vmatpush.msra.mxu2 %v19_v2  ;;  %43 = vmatpush.msra.mxu0 %v19_v2 }
   0x8   :  { %103 = vmatpush.msra.mxu2 %v18_v3  ;;  %44 = vmatpush.msra.mxu0 %v18_v3 }
   0x9   :  { %97 = vmatmul.msk.f32.vlgmr.msra.gmra.mxu2 %vm22_vm0, %v17_v4  ;;  %96 = vmatmul.msk.f32.vlgmr.msra.gmra.mxu0 %vm22_vm0, %v16_v5 }
  0x86   :  { %v46_v7 = vpop.f32.mrf.mxu0 }
  0x87   :  { %53 = vst.msk [vmem:[%s166_s3] sm:$0xff] %vm52_vm1, %v46_v7  ;;  %98 = vmatmul.msk.f32.vlgmr.msra.gmra.mxu1 %vm52_vm1, %v46_v7 }
  0x8c   :  { %v49_v8 = vpop.f32.mrf.mxu2 }
  0x8d   :  { %54 = vst.msk [vmem:[%s166_s3 + $0x8] sm:$0xff] %vm52_vm1, %v49_v8  ;;  %99 = vmatmul.msk.f32.vlgmr.msra.gmra.mxu3 %vm52_vm1, %v49_v8 }
 0x104   :  { %v79_v9 = vpop.f32.mrf.mxu1 }
 0x105   :  { %86 = vst.msk [vmem:[%s167_s4] sm:$0xff] %vm85_vm2, %v79_v9 }
 0x110   :  { %v82_v10 = vpop.f32.mrf.mxu3 }
 0x111   :  { %87 = vst.msk [vmem:[%s167_s4 + $0x8] sm:$0xff] %vm85_vm2, %v82_v10 }

// kernel: gat_forward.4
= control target key start
LH: loop header
LB: loop body
LE: loop exit
PB: predicated region body
PF: predicated region fallthrough
CT: control target
= control target key end

     0   :  { %10 = vsyncpa [#allocation3], 0  ;;  %s156_s18 = smov [#allocation2]   ;;  %s157_s20 = smov 128   ;;  %s229_s0 = inlined_call_operand.hbm [shape: f32[16,32], index: 0, kind: input, shape index: {}]   ;;  %s230_s1 = inlined_call_operand.vmem [shape: f32[32,32], index: 1, kind: input, shape index: {}]   ;;  %s231_s2 = inlined_call_operand.vmem [shape: f32[32,4], index: 2, kind: input, shape index: {}]   ;;  %s232_s3 = inlined_call_operand.vmem [shape: f32[16,32], index: 3, kind: output, shape index: {0}]   ;;  %s233_s4 = inlined_call_operand.vmem [shape: f32[16,4], index: 4, kind: output, shape index: {1}]  }
   0x1   :  { %s15_s17 = sshll.u32 %s229_s0, 4  ;;  %s17_s19 = sshll.u32 %s156_s18, 4  ;;  %s16_s17 = int_to_ptr.hbm [resolvable:$true] %s15_s17  ;;  %s18_s19 = int_to_ptr.vmem [resolvable:$true] %s17_s19 }
   0x2   :  { %s158_s21 = smov 8  }
   0x3   :  { %23 = dma.hbm_to_vmem [thread:$0]  %s16_s17, 256, %s18_s19, [#allocation3], %s157_s20, %s157_s20, %s158_s21  }
   0x4   :  { %154 = dma.done.wait [#allocation3], 256  }
   0x5   :  { %155 = vsyncadd [#allocation3], 4294967040  ;;  %v37_v0 = vld [vmem:[%s230_s1 + $0x18] sm:$0xff]  ;;  %v36_v1 = vld [vmem:[%s230_s1 + $0x10] sm:$0xff]  ;;  %vm38_vm0 = vcmask 261120   ;;  %vm103_vm1 = vcmask 31744  }
   0x6   :  { %119 = vmatpush.msra.mxu2 %v37_v0  ;;  %57 = vmatpush.msra.mxu0 %v37_v0  ;;  %v35_v2 = vld [vmem:[%s230_s1 + $0x8] sm:$0xff]  ;;  %v73_v3 = vld [vmem:[%s231_s2 + $0x18] sm:$0xff]  ;;  %v72_v4 = vld [vmem:[%s231_s2 + $0x10] sm:$0xff] }
   0x7   :  { %v34_v5 = vld [vmem:[%s230_s1] sm:$0xff]  ;;  %123 = vmatpush.msra.mxu3 %v73_v3  ;;  %92 = vmatpush.msra.mxu1 %v73_v3  ;;  %v33_v6 = vld [vmem:[#allocation2 + $0x8] sm:$0xff] }
   0x8   :  { %120 = vmatpush.msra.mxu2 %v36_v1  ;;  %58 = vmatpush.msra.mxu0 %v36_v1  ;;  %v32_v7 = vld [vmem:[#allocation2] sm:$0xff]  ;;  %v71_v8 = vld [vmem:[%s231_s2 + $0x8] sm:$0xff] }
   0x9   :  { %124 = vmatpush.msra.mxu3 %v72_v4  ;;  %93 = vmatpush.msra.mxu1 %v72_v4  ;;  %v70_v9 = vld [vmem:[%s231_s2] sm:$0xff] }
   0xa   :  { %121 = vmatpush.msra.mxu2 %v35_v2  ;;  %59 = vmatpush.msra.mxu0 %v35_v2 }
   0xb   :  { %125 = vmatpush.msra.mxu3 %v71_v8  ;;  %94 = vmatpush.msra.mxu1 %v71_v8 }
   0xc   :  { %122 = vmatpush.msra.mxu2 %v34_v5  ;;  %60 = vmatpush.msra.mxu0 %v34_v5 }
   0xd   :  { %116 = vmatmul.msk.f32.vlgmr.msra.gmra.mxu2 %vm38_vm0, %v33_v6  ;;  %115 = vmatmul.msk.f32.vlgmr.msra.gmra.mxu0 %vm38_vm0, %v32_v7 }
   0xe   :  { %126 = vmatpush.msra.mxu3 %v70_v9  ;;  %95 = vmatpush.msra.mxu1 %v70_v9 }
  0x8a   :  { %v62_v10 = vpop.f32.mrf.mxu0 }
  0x8b   :  { %68 = vst.msk [vmem:[%s232_s3] sm:$0xff] %vm38_vm0, %v62_v10  ;;  %117 = vmatmul.msk.f32.vlgmr.msra.gmra.mxu1 %vm38_vm0, %v62_v10 }
  0x90   :  { %v65_v11 = vpop.f32.mrf.mxu2 }
  0x91   :  { %69 = vst.msk [vmem:[%s232_s3 + $0x8] sm:$0xff] %vm38_vm0, %v65_v11  ;;  %118 = vmatmul.msk.f32.vlgmr.msra.gmra.mxu3 %vm38_vm0, %v65_v11 }
 0x108   :  { %v97_v12 = vpop.f32.mrf.mxu1 }
 0x109   :  { %104 = vst.msk [vmem:[%s233_s4] sm:$0xff] %vm103_vm1, %v97_v12 }
 0x114   :  { %v100_v13 = vpop.f32.mrf.mxu3 }
 0x115   :  { %105 = vst.msk [vmem:[%s233_s4 + $0x8] sm:$0xff] %vm103_vm1, %v100_v13 }
 0x116   :  { %114 = vsyncpa [#allocation3], 1 }

// kernel: gat_forward.5
= control target key start
LH: loop header
LB: loop body
LE: loop exit
PB: predicated region body
PF: predicated region fallthrough
CT: control target
= control target key end

     0   :  { %10 = vsyncpa [#allocation3], 0  ;;  %s325_s21 = smov [#allocation2]   ;;  %s326_s23 = smov 128   ;;  %s415_s0 = inlined_call_operand.vmem [shape: f32[16,2], index: 0, kind: input, shape index: {}]   ;;  %s416_s1 = inlined_call_operand.vmem [shape: f32[2,16], index: 1, kind: input, shape index: {}]   ;;  %s417_s2 = inlined_call_operand.vmem [shape: f32[16,16], index: 2, kind: input, shape index: {}]   ;;  %s418_s3 = inlined_call_operand.hbm [shape: f32[16,16], index: 3, kind: input, shape index: {}]   ;;  %s419_s4 = inlined_call_operand.vmem [shape: f32[16,32], index: 4, kind: input, shape index: {}]   ;;  %s420_s5 = inlined_call_operand.vmem [shape: f32[16,32], index: 5, kind: output, shape index: {}]  }
   0x1   :  { %s21_s20 = sshll.u32 %s418_s3, 4  ;;  %s23_s22 = sshll.u32 %s325_s21, 4  ;;  %s22_s20 = int_to_ptr.hbm [resolvable:$true] %s21_s20  ;;  %s24_s22 = int_to_ptr.vmem [resolvable:$true] %s23_s22 }
   0x2   :  { %s327_s24 = smov 8  }
   0x3   :  { %29 = dma.hbm_to_vmem [thread:$0]  %s22_s20, 256, %s24_s22, [#allocation3], %s326_s23, %s326_s23, %s327_s24  }
   0x4   :  { %323 = dma.done.wait [#allocation3], 256  }
   0x5   :  { %324 = vsyncadd [#allocation3], 4294967040  ;;  %v328_v0 = vmov 1   ;;  %v329_v1 = vmov 0   ;;  %v135_v2 = vld [vmem:[%s415_s0 + $0x8] sm:$0xff]  ;;  %v134_v3 = vld [vmem:[%s415_s0] sm:$0xff] }
   0x6   :  { %266 = vset.pattern.permute.xlu0 %v328_v0  ;;  %267 = vset.pattern.permute.xlu1 %v329_v1  ;;  %v137_v4 = vld [vmem:[%s419_s4] sm:$0xff]  ;;  %v138_v5 = vld [vmem:[%s419_s4 + $0x8] sm:$0xff]  ;;  %s330_s7 = smov 112   ;;  %vm70_vm3 = vcmask 130048   ;;  %vm239_vm11 = vcmask 261248  }
   0x7   :  { %146 = vperm.xlu0 %266, %v135_v2   ;;  %54 = vperm.xlu1 %267, %v135_v2   ;;  %v268_v6 = vpack.i.bf16 %v137_v4, %v138_v5  ;;  %v273_v7 = vld [vmem:[%s416_s1 + $0x1] ss:$0 sm:$0xff]  ;;  %v274_v8 = vld [vmem:[%s416_s1] ss:$0 sm:$0xff]  ;;  %v37_v13 = vld [vmem:[%s417_s2 + $0x8] sm:$0xff] }
   0x8   :  { %255 = vmatpush.msra.mxu2 %v138_v5  ;;  %109 = vmatpush.msra.mxu0 %v138_v5  ;;  %v41_v14 = vld [vmem:[#allocation2 + $0x8] sm:$0xff]  ;;  %vm39_vm2 = vcmp.gt.f32.partialorder %v37_v13, 0.0  ;;  %v36_v29 = vld [vmem:[%s417_s2] sm:$0xff]  ;;  %s331_s2 = smov 16  }
   0x9   :  { %v40_v30 = vld [vmem:[#allocation2] sm:$0xff]  ;;  %vm38_vm6 = vcmp.gt.f32.partialorder %v36_v29, 0.0 }
   0xa   :  { %256 = vmatpush.msra.mxu2 %v137_v4  ;;  %110 = vmatpush.msra.mxu0 %v137_v4 }
   0xf   :  { %141 = vperm.xlu0 %266, %v134_v3   ;;  %49 = vperm.xlu1 %267, %v134_v3  }
  0x17   :  { %269 = vrot.lane.b32.xlu0 %v268_v6, %s330_s7 }
  0x79   :  { %v147_v9 = vpop.permute.xlu0 %146  ;;  %v55_v10 = vpop.permute.xlu1 %54 }
  0x7a   :  { %v151_v11 = vadd.f32 %v273_v7, %v147_v9  ;;  %v59_v12 = vadd.f32 %v274_v8, %v55_v10 }
  0x7c   :  { %vm153_vm0 = vcmp.gt.f32.partialorder %v151_v11, 0.0  ;;  %v155_v15 = vmul.f32 0.2, %v151_v11  ;;  %vm61_vm1 = vcmp.gt.f32.partialorder %v59_v12, 0.0  ;;  %v63_v16 = vmul.f32 0.2, %v59_v12 }
  0x7e   :  { %v157_v17 = vsel %vm153_vm0, %v151_v11, %v155_v15  ;;  %v65_v18 = vsel %vm61_vm1, %v59_v12, %v63_v16 }
  0x7f   :  { %v159_v19 = vmul.f32 %v157_v17, %v41_v14  ;;  %v67_v20 = vmul.f32 %v65_v18, %v41_v14 }
  0x81   :  { %v142_v21 = vpop.permute.xlu0 %141  ;;  %v161_v22 = vsel %vm39_vm2, %v159_v19, -9e+15  ;;  %v69_v23 = vsel %vm39_vm2, %v67_v20, -9e+15  ;;  %v50_v24 = vpop.permute.xlu1 %49 }
  0x82   :  { %v150_v25 = vadd.f32 %v273_v7, %v142_v21  ;;  %v165_v26 = vsel %vm70_vm3, %v161_v22, -inf  ;;  %v74_v27 = vsel %vm70_vm3, %v69_v23, -inf  ;;  %v58_v28 = vadd.f32 %v274_v8, %v50_v24 }
  0x83   :  { %166 = vmax.xlane.f32.xlu2 %v165_v26  ;;  %75 = vmax.xlane.f32.xlu1 %v74_v27 }
  0x84   :  { %vm152_vm4 = vcmp.gt.f32.partialorder %v150_v25, 0.0  ;;  %v154_v31 = vmul.f32 0.2, %v150_v25  ;;  %vm60_vm5 = vcmp.gt.f32.partialorder %v58_v28, 0.0  ;;  %v62_v32 = vmul.f32 0.2, %v58_v28 }
  0x86   :  { %v156_v33 = vsel %vm152_vm4, %v150_v25, %v154_v31  ;;  %v64_v34 = vsel %vm60_vm5, %v58_v28, %v62_v32 }
  0x87   :  { %v158_v35 = vmul.f32 %v156_v33, %v40_v30  ;;  %v66_v37 = vmul.f32 %v64_v34, %v40_v30 }
  0x89   :  { %v160_v36 = vsel %vm38_vm6, %v158_v35, -9e+15  ;;  %v68_v39 = vsel %vm38_vm6, %v66_v37, -9e+15  ;;  %v270_v41 = vpop.permute.xlu0 %269 }
  0x8a   :  { %v162_v38 = vsel %vm70_vm3, %v160_v36, -inf  ;;  %v71_v40 = vsel %vm70_vm3, %v68_v39, -inf  ;;  %v271_v42 = vunpack.i.l.bf16 %v270_v41  ;;  %v272_v43 = vunpack.i.h.bf16 %v270_v41 }
  0x8b   :  { %163 = vmax.xlane.f32.xlu2 %v162_v38 }
  0x8c   :  { %208 = vmatpush.msra.mxu1 %v271_v42  ;;  %257 = vmatpush.msra.mxu3 %v271_v42 }
  0x8e   :  { %209 = vmatpush.msra.mxu1 %v272_v43  ;;  %258 = vmatpush.msra.mxu3 %v272_v43 }
  0x93   :  { %72 = vmax.xlane.f32.xlu2 %v71_v40 }
  0xf6   :  { %v167_v44 = vpop.xlane.xlu2 %166  ;;  %v76_v45 = vpop.xlane.xlu1 %75 }
  0xf7   :  { %v169_v46 = vsub.f32 %v161_v22, %v167_v44  ;;  %v78_v47 = vsub.f32 %v69_v23, %v76_v45 }
  0xf9   :  { %v172_v48 = vmul.f32 1.442695, %v169_v46  ;;  %v81_v49 = vmul.f32 1.442695, %v78_v47 }
  0xfb   :  { %275 = vpow2.f32 %v172_v48 }
  0xfc   :  { %277 = vpow2.f32 %v81_v49 }
  0xfe   :  { %v164_v50 = vpop.xlane.xlu2 %163 }
  0xff   :  { %v168_v51 = vsub.f32 %v160_v36, %v164_v50 }
 0x101   :  { %v276_v52 = vpop.eup %275  ;;  %v170_v53 = vmul.f32 1.442695, %v168_v51 }
 0x102   :  { %v278_v54 = vpop.eup %277  ;;  %252 = vmatmul.msk.f32.vlgmr.msra.gmra.mxu3 %vm70_vm3, %v276_v52  ;;  %v177_v55 = vsel %vm70_vm3, %v276_v52, 0.0 }
 0x103   :  { %279 = vpow2.f32 %v170_v53  ;;  %248 = vmatmul.msk.f32.vlgmr.msra.gmra.mxu2 %vm70_vm3, %v278_v54  ;;  %178 = vadd.xlane.f32.xlu2 %v177_v55  ;;  %v86_v63 = vsel %vm70_vm3, %v278_v54, 0.0 }
 0x106   :  { %v73_v56 = vpop.xlane.xlu2 %72 }
 0x107   :  { %v77_v57 = vsub.f32 %v68_v39, %v73_v56 }
 0x109   :  { %v280_v58 = vpop.eup %279  ;;  %v79_v59 = vmul.f32 1.442695, %v77_v57 }
 0x10a   :  { %251 = vmatmul.msk.f32.vlgmr.msra.gmra.mxu1 %vm70_vm3, %v280_v58  ;;  %v174_v60 = vsel %vm70_vm3, %v280_v58, 0.0 }
 0x10b   :  { %281 = vpow2.f32 %v79_v59  ;;  %175 = vadd.xlane.f32.xlu0 %v174_v60 }
 0x111   :  { %v282_v61 = vpop.eup %281 }
 0x112   :  { %247 = vmatmul.msk.f32.vlgmr.msra.gmra.mxu0 %vm70_vm3, %v282_v61  ;;  %v83_v62 = vsel %vm70_vm3, %v282_v61, 0.0 }
 0x113   :  { %84 = vadd.xlane.f32.xlu2 %v83_v62 }
 0x11b   :  { %87 = vadd.xlane.f32.xlu2 %v86_v63 }
 0x176   :  { %v179_v0 = vpop.xlane.xlu2 %178 }
 0x177   :  { %283 = vrcp.f32 %v179_v0 }
 0x17d   :  { %v284_v2 = vpop.eup %283 }
 0x17e   :  { %v176_v1 = vpop.xlane.xlu0 %175 }
 0x17f   :  { %285 = vrcp.f32 %v176_v1 }
 0x185   :  { %v214_v3 = vpop.f32.mrf.mxu3  ;;  %v286_v6 = vpop.eup %285 }
 0x186   :  { %v220_v4 = vmul.f32 %v284_v2, %v214_v3  ;;  %v85_v5 = vpop.xlane.xlu2 %84  ;;  %v115_v22 = vpop.f32.mrf.mxu2 }
 0x187   :  { %v211_v7 = vpop.f32.mrf.mxu1  ;;  %287 = vrcp.f32 %v85_v5 }
 0x188   :  { %v225_v8 = vmul.f32 1.442695, %v220_v4  ;;  %v219_v9 = vmul.f32 %v286_v6, %v211_v7  ;;  %vm222_vm7 = vcmp.gt.f32.partialorder %v220_v4, 0.0 }
 0x18a   :  { %289 = vpow2.f32 %v225_v8  ;;  %v223_v10 = vmul.f32 1.442695, %v219_v9  ;;  %vm221_vm8 = vcmp.gt.f32.partialorder %v219_v9, 0.0 }
 0x18c   :  { %291 = vpow2.f32 %v223_v10 }
 0x18d   :  { %v288_v12 = vpop.eup %287 }
 0x18e   :  { %v88_v11 = vpop.xlane.xlu2 %87 }
 0x18f   :  { %293 = vrcp.f32 %v88_v11  ;;  %v112_v13 = vpop.f32.mrf.mxu0 }
 0x190   :  { %v290_v14 = vpop.eup %289  ;;  %v120_v15 = vmul.f32 %v288_v12, %v112_v13 }
 0x191   :  { %v254_v16 = vadd.f32 -1.0, %v290_v14 }
 0x192   :  { %v292_v17 = vpop.eup %291  ;;  %v124_v18 = vmul.f32 1.442695, %v120_v15  ;;  %vm122_vm9 = vcmp.gt.f32.partialorder %v120_v15, 0.0 }
 0x193   :  { %v230_v19 = vsel %vm222_vm7, %v220_v4, %v254_v16  ;;  %v253_v20 = vadd.f32 -1.0, %v292_v17 }
 0x194   :  { %295 = vpow2.f32 %v124_v18  ;;  %235 = vrot.lane.b32.xlu1 %v230_v19, %s331_s2 }
 0x195   :  { %v294_v21 = vpop.eup %293  ;;  %v229_v23 = vsel %vm221_vm8, %v219_v9, %v253_v20 }
 0x196   :  { %v121_v24 = vmul.f32 %v294_v21, %v115_v22  ;;  %233 = vrot.lane.b32.xlu2 %v229_v23, %s331_s2 }
 0x198   :  { %v126_v25 = vmul.f32 1.442695, %v121_v24  ;;  %vm123_vm10 = vcmp.gt.f32.partialorder %v121_v24, 0.0 }
 0x19a   :  { %v296_v26 = vpop.eup %295  ;;  %297 = vpow2.f32 %v126_v25 }
 0x19b   :  { %v249_v27 = vadd.f32 -1.0, %v296_v26 }
 0x19d   :  { %v130_v28 = vsel %vm122_vm9, %v120_v15, %v249_v27 }
 0x19e   :  { %132 = vst.msk [vmem:[%s420_s5] sm:$0xff] %vm70_vm3, %v130_v28 }
 0x1a0   :  { %v298_v29 = vpop.eup %297 }
 0x1a1   :  { %v250_v30 = vadd.f32 -1.0, %v298_v29 }
 0x1a3   :  { %v131_v31 = vsel %vm123_vm10, %v121_v24, %v250_v30 }
 0x1a4   :  { %133 = vst.msk [vmem:[%s420_s5 + $0x8] sm:$0xff] %vm70_vm3, %v131_v31 }
 0x1f0   :  { %v234_v32 = vpop.permute.xlu2 %233 }
 0x1f1   :  { %240 = vst.msk [vmem:[%s420_s5] sm:$0xff] %vm239_vm11, %v234_v32 }
 0x206   :  { %v236_v33 = vpop.permute.xlu1 %235 }
 0x207   :  { %241 = vst.msk [vmem:[%s420_s5 + $0x8] sm:$0xff] %vm239_vm11, %v236_v33 }
 0x208   :  { %246 = vsyncpa [#allocation3], 1 }

// kernel: gat_forward.7
= control target key start
LH: loop header
LB: loop body
LE: loop exit
PB: predicated region body
PF: predicated region fallthrough
CT: control target
= control target key end

     0   :  { %v184_v0 = vmov 0   ;;  %vm58_vm2 = vcmask 130048   ;;  %vm120_vm5 = vcmask 64512   ;;  %s273_s0 = inlined_call_operand.vmem [shape: f32[16,1], index: 0, kind: input, shape index: {}]   ;;  %s274_s1 = inlined_call_operand.vmem [shape: f32[1,16], index: 1, kind: input, shape index: {}]   ;;  %s275_s2 = inlined_call_operand.vmem [shape: f32[16,16], index: 2, kind: input, shape index: {}]   ;;  %s276_s3 = inlined_call_operand.vmem [shape: f32[16,16], index: 3, kind: input, shape index: {}]   ;;  %s277_s4 = inlined_call_operand.vmem [shape: f32[16,8], index: 4, kind: input, shape index: {}]   ;;  %s278_s5 = inlined_call_operand.vmem [shape: f32[16,8], index: 5, kind: output, shape index: {0}]   ;;  %s279_s6 = inlined_call_operand.vmem [shape: f32[16,8], index: 6, kind: output, shape index: {1}]  }
   0x1   :  { %162 = vset.pattern.permute.xlu0 %v184_v0  ;;  %v26_v1 = vld [vmem:[%s273_s0] sm:$0xff]  ;;  %v27_v2 = vld [vmem:[%s273_s0 + $0x8] sm:$0xff] }
   0x2   :  { %35 = vperm.xlu0 %162, %v26_v1   ;;  %v163_v3 = vld [vmem:[%s274_s1] ss:$0 sm:$0xff]  ;;  %v23_v15 = vld [vmem:[%s275_s2 + $0x8] sm:$0xff] }
   0x3   :  { %v22_v6 = vld [vmem:[%s275_s2] sm:$0xff]  ;;  %v30_v17 = vld [vmem:[%s276_s3 + $0x8] sm:$0xff]  ;;  %vm25_vm4 = vcmp.gt.f32.partialorder %v23_v15, 0.0 }
   0x4   :  { %v29_v8 = vld [vmem:[%s276_s3] sm:$0xff]  ;;  %vm24_vm1 = vcmp.gt.f32.partialorder %v22_v6, 0.0  ;;  %v32_v22 = vld [vmem:[%s277_s4 + $0x8] sm:$0xff] }
   0x5   :  { %97 = vmatpush.msra.mxu0 %v32_v22  ;;  %159 = vmatpush.msra.mxu1 %v32_v22  ;;  %v31_v23 = vld [vmem:[%s277_s4] sm:$0xff] }
   0x7   :  { %98 = vmatpush.msra.mxu0 %v31_v23  ;;  %160 = vmatpush.msra.mxu1 %v31_v23 }
   0xa   :  { %40 = vperm.xlu0 %162, %v27_v2  }
  0x74   :  { %v36_v4 = vpop.permute.xlu0 %35 }
  0x75   :  { %v46_v5 = vadd.f32 %v163_v3, %v36_v4 }
  0x77   :  { %vm48_vm0 = vcmp.gt.f32.partialorder %v46_v5, 0.0  ;;  %v50_v7 = vmul.f32 0.2, %v46_v5 }
  0x79   :  { %v52_v9 = vsel %vm48_vm0, %v46_v5, %v50_v7 }
  0x7a   :  { %v54_v10 = vmul.f32 %v52_v9, %v29_v8 }
  0x7c   :  { %v41_v11 = vpop.permute.xlu0 %40  ;;  %v56_v12 = vsel %vm24_vm1, %v54_v10, -9e+15 }
  0x7d   :  { %v47_v13 = vadd.f32 %v163_v3, %v41_v11  ;;  %v59_v14 = vsel %vm58_vm2, %v56_v12, -inf }
  0x7e   :  { %60 = vmax.xlane.f32.xlu1 %v59_v14 }
  0x7f   :  { %vm49_vm3 = vcmp.gt.f32.partialorder %v47_v13, 0.0  ;;  %v51_v16 = vmul.f32 0.2, %v47_v13 }
  0x81   :  { %v53_v18 = vsel %vm49_vm3, %v47_v13, %v51_v16 }
  0x82   :  { %v55_v19 = vmul.f32 %v53_v18, %v30_v17 }
  0x84   :  { %v57_v20 = vsel %vm25_vm4, %v55_v19, -9e+15 }
  0x85   :  { %v62_v21 = vsel %vm58_vm2, %v57_v20, -inf }
  0x86   :  { %63 = vmax.xlane.f32.xlu1 %v62_v21 }
  0xf1   :  { %v61_v24 = vpop.xlane.xlu1 %60 }
  0xf2   :  { %v65_v25 = vsub.f32 %v56_v12, %v61_v24 }
  0xf4   :  { %v67_v26 = vmul.f32 1.442695, %v65_v25 }
  0xf6   :  { %164 = vpow2.f32 %v67_v26 }
  0xf9   :  { %v64_v27 = vpop.xlane.xlu1 %63 }
  0xfa   :  { %v66_v28 = vsub.f32 %v57_v20, %v64_v27 }
  0xfc   :  { %v165_v29 = vpop.eup %164  ;;  %v69_v30 = vmul.f32 1.442695, %v66_v28 }
  0xfd   :  { %155 = vmatmul.msk.f32.vlgmr.msra.gmra.mxu0 %vm58_vm2, %v165_v29  ;;  %v71_v31 = vsel %vm58_vm2, %v165_v29, 0.0 }
  0xfe   :  { %166 = vpow2.f32 %v69_v30  ;;  %72 = vadd.xlane.f32.xlu2 %v71_v31 }
 0x104   :  { %v167_v32 = vpop.eup %166 }
 0x105   :  { %156 = vmatmul.msk.f32.vlgmr.msra.gmra.mxu1 %vm58_vm2, %v167_v32  ;;  %v74_v33 = vsel %vm58_vm2, %v167_v32, 0.0 }
 0x106   :  { %75 = vadd.xlane.f32.xlu2 %v74_v33 }
 0x171   :  { %v73_v34 = vpop.xlane.xlu2 %72 }
 0x172   :  { %168 = vrcp.f32 %v73_v34 }
 0x178   :  { %v169_v36 = vpop.eup %168 }
 0x179   :  { %v76_v35 = vpop.xlane.xlu2 %75 }
 0x17a   :  { %v100_v37 = vpop.f32.mrf.mxu0  ;;  %170 = vrcp.f32 %v76_v35 }
 0x17b   :  { %v108_v38 = vmul.f32 %v169_v36, %v100_v37 }
 0x17d   :  { %v112_v39 = vmul.f32 1.442695, %v108_v38  ;;  %vm110_vm6 = vcmp.gt.f32.partialorder %v108_v38, 0.0 }
 0x17f   :  { %172 = vpow2.f32 %v112_v39 }
 0x180   :  { %v171_v40 = vpop.eup %170 }
 0x182   :  { %v103_v41 = vpop.f32.mrf.mxu1 }
 0x183   :  { %v109_v42 = vmul.f32 %v171_v40, %v103_v41 }
 0x185   :  { %v173_v43 = vpop.eup %172  ;;  %v114_v44 = vmul.f32 1.442695, %v109_v42  ;;  %vm111_vm7 = vcmp.gt.f32.partialorder %v109_v42, 0.0 }
 0x186   :  { %v157_v45 = vadd.f32 -1.0, %v173_v43 }
 0x187   :  { %174 = vpow2.f32 %v114_v44 }
 0x188   :  { %v118_v46 = vsel %vm110_vm6, %v108_v38, %v157_v45 }
 0x189   :  { %v123_v47 = vsel %vm120_vm5, %v118_v46, -inf  ;;  %121 = vst.msk [vmem:[%s278_s5] sm:$0xff] %vm120_vm5, %v118_v46 }
 0x18a   :  { %124 = vmax.xlane.f32.xlu0 %v123_v47 }
 0x18d   :  { %v175_v48 = vpop.eup %174 }
 0x18e   :  { %v158_v49 = vadd.f32 -1.0, %v175_v48 }
 0x190   :  { %v119_v50 = vsel %vm111_vm7, %v109_v42, %v158_v49 }
 0x191   :  { %v126_v51 = vsel %vm120_vm5, %v119_v50, -inf  ;;  %122 = vst.msk [vmem:[%s278_s5 + $0x8] sm:$0xff] %vm120_vm5, %v119_v50 }
 0x192   :  { %127 = vmax.xlane.f32.xlu1 %v126_v51 }
 0x1fd   :  { %v125_v52 = vpop.xlane.xlu0 %124 }
 0x1fe   :  { %v129_v53 = vsub.f32 %v118_v46, %v125_v52 }
 0x200   :  { %v131_v54 = vmul.f32 1.442695, %v129_v53 }
 0x202   :  { %176 = vpow2.f32 %v131_v54 }
 0x205   :  { %v128_v55 = vpop.xlane.xlu1 %127 }
 0x206   :  { %v130_v56 = vsub.f32 %v119_v50, %v128_v55 }
 0x208   :  { %v177_v57 = vpop.eup %176  ;;  %v133_v58 = vmul.f32 1.442695, %v130_v56 }
 0x209   :  { %v135_v59 = vsel %vm120_vm5, %v177_v57, 0.0 }
 0x20a   :  { %178 = vpow2.f32 %v133_v58  ;;  %136 = vadd.xlane.f32.xlu2 %v135_v59 }
 0x210   :  { %v179_v60 = vpop.eup %178 }
 0x211   :  { %v138_v61 = vsel %vm120_vm5, %v179_v60, 0.0 }
 0x212   :  { %139 = vadd.xlane.f32.xlu1 %v138_v61 }
 0x27d   :  { %v137_v62 = vpop.xlane.xlu2 %136 }
 0x27e   :  { %180 = vrcp.f32 %v137_v62 }
 0x284   :  { %v181_v63 = vpop.eup %180 }
 0x285   :  { %v143_v0 = vmul.f32 %v181_v63, %v177_v57  ;;  %v140_v1 = vpop.xlane.xlu1 %139 }
 0x286   :  { %182 = vrcp.f32 %v140_v1 }
 0x287   :  { %145 = vst.msk [vmem:[%s279_s6] sm:$0xff] %vm120_vm5, %v143_v0 }
 0x28c   :  { %v183_v2 = vpop.eup %182 }
 0x28d   :  { %v144_v3 = vmul.f32 %v183_v2, %v179_v60 }
 0x28f   :  { %146 = vst.msk [vmem:[%s279_s6 + $0x8] sm:$0xff] %vm120_vm5, %v144_v3 }

</bundles_post_ra>
